<compile_context>
chip_gen: v7x
topology: tpu7x:2x2x1
jax: 0.10.0
libtpu: 0.0.40
codegen_flags: <defaults>
</compile_context>

<pallas_src>
import jax
import jax.numpy as jnp
from jax.experimental import pallas as pl
from jax.experimental.pallas import tpu as pltpu

LANE = 128          # lane width (last-dim alignment: dense stores, MXU fill)
SUBLANE = 8         # sublane width (second-to-last-dim alignment)
MAX_BATCH_TILE = 512
NEG_BIG = -1e30     # "minus infinity" for padded class columns (exp -> 0)


def _round_up(x, m):
    return (x + m - 1) // m * m


# --------------------------------------------------------------------------
# Kernel: one batch tile, weights fully resident in VMEM.
# --------------------------------------------------------------------------
def _mlp_kernel(x_ref, w1_ref, b1_ref, w2_ref, b2_ref, o_ref):
    # ---- layer 1: Linear (bf16 MXU, f32 accumulate) + Sigmoid (EUP) ----
    h = jnp.dot(x_ref[...], w1_ref[...], preferred_element_type=jnp.float32)
    h = jax.nn.sigmoid(h + b1_ref[...])                 # (TB, Hp) + (1, Hp)

    # ---- layer 2: Linear ----
    logits = jnp.dot(h.astype(w2_ref.dtype), w2_ref[...],
                     preferred_element_type=jnp.float32)
    logits = logits + b2_ref[...]                       # pad classes get NEG_BIG

    # ---- softmax over the class (lane) axis ----
    m = jnp.max(logits, axis=-1, keepdims=True)
    e = jnp.exp(logits - m)                             # pad cols -> exp(~-inf)=0
    denom = jnp.sum(e, axis=-1, keepdims=True)
    o_ref[...] = (e * pl.reciprocal(denom, approx=True)).astype(o_ref.dtype)


# --------------------------------------------------------------------------
# One-time parameter preparation (do NOT call per forward pass).
# --------------------------------------------------------------------------
def prepare_params(w1, b1, w2, b2, compute_dtype=jnp.bfloat16):
    """w1: (H, D), b1: (H,), w2: (C, H), b2: (C,).
    Returns pre-transposed, lane-padded, bf16 weights + f32 biases."""
    H, D = w1.shape
    C, _ = w2.shape
    Hp = _round_up(H, LANE)
    Cp = _round_up(C, LANE)

    # (D, Hp): pad hidden columns with zeros -> pad hidden units contribute 0
    # to layer-2 because the matching rows of w2_t are also zero.
    w1_t = jnp.zeros((D, Hp), compute_dtype).at[:, :H].set(
        jnp.transpose(w1).astype(compute_dtype))
    b1_p = jnp.zeros((1, Hp), jnp.float32).at[0, :H].set(b1.astype(jnp.float32))

    # (Hp, Cp): pad class columns get a huge negative bias so softmax weight = 0.
    w2_t = jnp.zeros((Hp, Cp), compute_dtype).at[:H, :C].set(
        jnp.transpose(w2).astype(compute_dtype))
    b2_p = jnp.full((1, Cp), NEG_BIG, jnp.float32).at[0, :C].set(
        b2.astype(jnp.float32))

    return {"w1_t": w1_t, "b1": b1_p, "w2_t": w2_t, "b2": b2_p,
            "num_classes": C, "input_dim": D}


# --------------------------------------------------------------------------
# Forward pass.
# --------------------------------------------------------------------------
def two_layer_net_forward(x, params, *, batch_tile=MAX_BATCH_TILE):
    w1_t, b1 = params["w1_t"], params["b1"]
    w2_t, b2 = params["w2_t"], params["b2"]
    C = params["num_classes"]

    B = x.shape[0]
    x2d = x.reshape(B, -1)                      # x.view(B, -1)
    D, Hp = w1_t.shape
    _, Cp = w2_t.shape
    assert x2d.shape[1] == D, "flattened input dim mismatch"

    compute_dtype = w1_t.dtype
    # Batch tile: multiple of 8 sublanes, capped; pad batch to a tile multiple.
    TB = _round_up(min(batch_tile, _round_up(B, SUBLANE)), SUBLANE)
    Bp = _round_up(B, TB)

    xb = x2d.astype(compute_dtype)
    if Bp != B:
        xb = jnp.pad(xb, ((0, Bp - B), (0, 0)))
    n_blocks = Bp // TB

    # VMEM budget: resident weights/biases + double-buffered x / out tiles.
    est_bytes = ((w1_t.size + w2_t.size) * jnp.dtype(compute_dtype).itemsize
                 + (b1.size + b2.size) * 4
                 + 2 * TB * (D * jnp.dtype(compute_dtype).itemsize + Cp * 4)
                 + (1 << 20))
    vmem_limit = int(min(max(2 * est_bytes, 32 * 1024 * 1024),
                         64 * 1024 * 1024))

    out = pl.pallas_call(
        _mlp_kernel,
        out_shape=jax.ShapeDtypeStruct((Bp, Cp), jnp.float32),
        grid_spec=pltpu.PrefetchScalarGridSpec(
            num_scalar_prefetch=0,
            grid=(n_blocks,),
            in_specs=[
                pl.BlockSpec((TB, D), lambda i: (i, 0)),   # x: batch-tiled
                pl.BlockSpec((D, Hp), lambda i: (0, 0)),   # W1: VMEM-resident
                pl.BlockSpec((1, Hp), lambda i: (0, 0)),   # b1
                pl.BlockSpec((Hp, Cp), lambda i: (0, 0)),  # W2: VMEM-resident
                pl.BlockSpec((1, Cp), lambda i: (0, 0)),   # b2
            ],
            out_specs=pl.BlockSpec((TB, Cp), lambda i: (i, 0)),
        ),
        compiler_params=pltpu.CompilerParams(
            dimension_semantics=("parallel",),
            vmem_limit_bytes=vmem_limit,
        ),
    )(xb, w1_t, b1, w2_t, b2)

    return out[:B, :C]


def init_params(key, input_dim, hidden_size, num_classes):
    """Deterministic init mirroring nn.Linear's default U(-1/sqrt(fan_in), +)."""
    k1, k2, k3, k4 = jax.random.split(key, 4)
    bound1 = 1.0 / (input_dim ** 0.5)
    bound2 = 1.0 / (hidden_size ** 0.5)
    w1 = jax.random.uniform(k1, (hidden_size, input_dim), jnp.float32, -bound1, bound1)
    b1 = jax.random.uniform(k2, (hidden_size,), jnp.float32, -bound1, bound1)
    w2 = jax.random.uniform(k3, (num_classes, hidden_size), jnp.float32, -bound2, bound2)
    b2 = jax.random.uniform(k4, (num_classes,), jnp.float32, -bound2, bound2)
    return w1, b1, w2, b2


if __name__ == "__main__":
    key = jax.random.PRNGKey(0)
    kx, kp = jax.random.split(key)

    # Small shapes consistent with the module's forward.
    batch, input_dim, hidden_size, num_classes = 8, 64, 32, 16
    x = jax.random.normal(kx, (batch, input_dim), jnp.float32)

    w1, b1, w2, b2 = init_params(kp, input_dim, hidden_size, num_classes)
    params = prepare_params(w1, b1, w2, b2)          # one-time prep

    out = two_layer_net_forward(x, params)
    out = jax.block_until_ready(out)

    # Reference check in plain JAX (f32 everywhere).
    h_ref = jax.nn.sigmoid(x @ w1.T + b1)
    ref = jax.nn.softmax(h_ref @ w2.T + b2, axis=1)
    assert out.shape == (batch, num_classes)
    # bf16 matmul operands + approx reciprocal -> loosened tolerance.
    assert jnp.allclose(out, ref, atol=2e-2, rtol=2e-2), float(jnp.max(jnp.abs(out - ref)))
    assert jnp.allclose(out.sum(axis=1), 1.0, atol=1e-2)

    print("KERNEL_OK")
</pallas_src>

<mosaic_0001>
module attributes {stable_mosaic.version = 11 : i64} {
  func.func @_mlp_kernel(%arg0: i32, %arg1: memref<8x64xbf16, #tpu.memory_space<vmem>>, %arg2: memref<64x128xbf16, #tpu.memory_space<vmem>>, %arg3: memref<1x128xf32, #tpu.memory_space<vmem>>, %arg4: memref<128x128xbf16, #tpu.memory_space<vmem>>, %arg5: memref<1x128xf32, #tpu.memory_space<vmem>>, %arg6: memref<8x128xf32, #tpu.memory_space<vmem>>) attributes {dimension_semantics = [#tpu.dimension_semantics<parallel>], iteration_bounds = array<i64: 1>, scalar_prefetch = 0 : i64, scratch_operands = 0 : i64, tpu.core_type = #tpu.core_type<tc>, window_params = [{transform_indices = @transform_0, window_bounds = array<i64: 8, 64>}, {pipeline_mode = #tpu.pipeline_mode<synchronous>, transform_indices = @transform_1, window_bounds = array<i64: 64, 128>}, {pipeline_mode = #tpu.pipeline_mode<synchronous>, transform_indices = @transform_2, window_bounds = array<i64: 1, 128>}, {pipeline_mode = #tpu.pipeline_mode<synchronous>, transform_indices = @transform_3, window_bounds = array<i64: 128, 128>}, {pipeline_mode = #tpu.pipeline_mode<synchronous>, transform_indices = @transform_4, window_bounds = array<i64: 1, 128>}, {transform_indices = @transform_5, window_bounds = array<i64: 8, 128>}]} {
    %c0 = arith.constant 0 : index
    %c0_0 = arith.constant 0 : index
    %0 = vector.load %arg1[%c0, %c0_0] : memref<8x64xbf16, #tpu.memory_space<vmem>>, vector<8x64xbf16>
    %c0_1 = arith.constant 0 : index
    %c0_2 = arith.constant 0 : index
    %1 = vector.load %arg2[%c0_1, %c0_2] : memref<64x128xbf16, #tpu.memory_space<vmem>>, vector<64x128xbf16>
    %cst = arith.constant dense<0.000000e+00> : vector<8x128xf32>
    %2 = tpu.matmul %0, %1, %cst {dimension_numbers = #tpu.dot_dimension_numbers<[1], [0], [0], [1], [0, 0, 1, 1], [], []>} : vector<8x64xbf16>, vector<64x128xbf16>, vector<8x128xf32> -> vector<8x128xf32>
    %c0_3 = arith.constant 0 : index
    %c0_4 = arith.constant 0 : index
    %3 = vector.load %arg3[%c0_3, %c0_4] : memref<1x128xf32, #tpu.memory_space<vmem>>, vector<1x128xf32>
    %4 = vector.broadcast %3 : vector<1x128xf32> to vector<8x128xf32>
    %5 = arith.addf %2, %4 : vector<8x128xf32>
    %6 = arith.negf %5 : vector<8x128xf32>
    %7 = math.exp %6 : vector<8x128xf32>
    %cst_5 = arith.constant 1.000000e+00 : f32
    %8 = vector.broadcast %cst_5 : f32 to vector<8x128xf32>
    %9 = arith.addf %8, %7 : vector<8x128xf32>
    %10 = arith.divf %8, %9 : vector<8x128xf32>
    %11 = arith.truncf %10 : vector<8x128xf32> to vector<8x128xbf16>
    %c0_6 = arith.constant 0 : index
    %c0_7 = arith.constant 0 : index
    %12 = vector.load %arg4[%c0_6, %c0_7] : memref<128x128xbf16, #tpu.memory_space<vmem>>, vector<128x128xbf16>
    %cst_8 = arith.constant dense<0.000000e+00> : vector<8x128xf32>
    %13 = tpu.matmul %11, %12, %cst_8 {dimension_numbers = #tpu.dot_dimension_numbers<[1], [0], [0], [1], [0, 0, 1, 1], [], []>} : vector<8x128xbf16>, vector<128x128xbf16>, vector<8x128xf32> -> vector<8x128xf32>
    %c0_9 = arith.constant 0 : index
    %c0_10 = arith.constant 0 : index
    %14 = vector.load %arg5[%c0_9, %c0_10] : memref<1x128xf32, #tpu.memory_space<vmem>>, vector<1x128xf32>
    %15 = vector.broadcast %14 : vector<1x128xf32> to vector<8x128xf32>
    %16 = arith.addf %13, %15 : vector<8x128xf32>
    %cst_11 = arith.constant dense<0xFF800000> : vector<8xf32>
    %17 = vector.multi_reduction <maximumf>, %16, %cst_11 [1] : vector<8x128xf32> to vector<8xf32>
    %18 = vector.shape_cast %17 : vector<8xf32> to vector<8x1xf32>
    %19 = vector.broadcast %18 : vector<8x1xf32> to vector<8x128xf32>
    %20 = arith.subf %16, %19 : vector<8x128xf32>
    %21 = math.exp %20 : vector<8x128xf32>
    %cst_12 = arith.constant dense<0.000000e+00> : vector<8xf32>
    %22 = vector.multi_reduction <add>, %21, %cst_12 [1] : vector<8x128xf32> to vector<8xf32>
    %23 = vector.shape_cast %22 : vector<8xf32> to vector<8x1xf32>
    %24 = tpu.reciprocal %23 {approx = true} : vector<8x1xf32> -> vector<8x1xf32>
    %25 = vector.broadcast %24 : vector<8x1xf32> to vector<8x128xf32>
    %26 = arith.mulf %21, %25 : vector<8x128xf32>
    %c0_13 = arith.constant 0 : index
    %c0_14 = arith.constant 0 : index
    %27 = vector.load %arg6[%c0_13, %c0_14] : memref<8x128xf32, #tpu.memory_space<vmem>>, vector<8x128xf32>
    tpu.vector_store %arg6[%c0_13, %c0_14], %26 {strides = array<i32>} : memref<8x128xf32, #tpu.memory_space<vmem>>, vector<8x128xf32>,
    return
  }
  func.func @transform_0(%arg0: i32) -> (i32, i32) {
    %c0_i32 = arith.constant 0 : i32
    %c0_i32_0 = arith.constant 0 : i32
    return %arg0, %c0_i32 : i32, i32
  }
  func.func @transform_1(%arg0: i32) -> (i32, i32) {
    %c0_i32 = arith.constant 0 : i32
    %c0_i32_0 = arith.constant 0 : i32
    %c0_i32_1 = arith.constant 0 : i32
    return %c0_i32, %c0_i32_0 : i32, i32
  }
  func.func @transform_2(%arg0: i32) -> (i32, i32) {
    %c0_i32 = arith.constant 0 : i32
    %c0_i32_0 = arith.constant 0 : i32
    %c0_i32_1 = arith.constant 0 : i32
    return %c0_i32, %c0_i32_0 : i32, i32
  }
  func.func @transform_3(%arg0: i32) -> (i32, i32) {
    %c0_i32 = arith.constant 0 : i32
    %c0_i32_0 = arith.constant 0 : i32
    %c0_i32_1 = arith.constant 0 : i32
    return %c0_i32, %c0_i32_0 : i32, i32
  }
  func.func @transform_4(%arg0: i32) -> (i32, i32) {
    %c0_i32 = arith.constant 0 : i32
    %c0_i32_0 = arith.constant 0 : i32
    %c0_i32_1 = arith.constant 0 : i32
    return %c0_i32, %c0_i32_0 : i32, i32
  }
  func.func @transform_5(%arg0: i32) -> (i32, i32) {
    %c0_i32 = arith.constant 0 : i32
    %c0_i32_0 = arith.constant 0 : i32
    return %arg0, %c0_i32 : i32, i32
  }
}

</mosaic_0001>

<bundles_post_ra>
// kernel: tpu_custom_call.1
= control target key start
LH: loop header
LB: loop body
LE: loop exit
PB: predicated region body
PF: predicated region fallthrough
CT: control target
= control target key end

     0   :  { %10 = vsyncpa [#allocation3], 0  ;;  %s571_s0 = inlined_call_operand.hbm [shape: bf16[8,64], index: 0, kind: input, shape index: {}]   ;;  %s572_s1 = inlined_call_operand.hbm [shape: bf16[64,128], index: 1, kind: input, shape index: {}]   ;;  %s573_s2 = inlined_call_operand.vmem [shape: f32[1,128], index: 2, kind: input, shape index: {}]   ;;  %s574_s3 = inlined_call_operand.hbm [shape: bf16[128,128], index: 3, kind: input, shape index: {}]   ;;  %s575_s4 = inlined_call_operand.vmem [shape: f32[1,128], index: 4, kind: input, shape index: {}]   ;;  %s576_s5 = inlined_call_operand.hbm [shape: f32[8,128], index: 5, kind: output, shape index: {}]  }
   0x1   :  { %11 = vsyncpa [#allocation6], 0 }
   0x2   :  { %12 = vsyncpa [#allocation4], 0  ;;  %s473_s18 = smov [#allocation5]   ;;  %s379_s22 = scalar_lea.hbm %s572_s1, 512 }
   0x3   :  { %s28_s19 = sshll.u32 %s473_s18, 4  ;;  %p380_p0 = scmp.ne.s32.totalorder %s572_s1, %s379_s22  ;;  %s29_s19 = int_to_ptr.vmem [resolvable:$true] %s28_s19 }
   0x4   :  { %p383_p1 = scmp.lt.u32.totalorder %s379_s22, %s572_s1 }
   0x6   :  { %p385_p2 = pnand %p383_p1, %p380_p0 }
   0x8   :  { %388 = shalt.err (!%p385_p2)
}
   0x9   :  { %s389_s27 = scalar_lea.vmem %s29_s19, 512  ;;  %p394_p4 = scmp.lt.s32.totalorder %s29_s19, %s29_s19 }
   0xa   :  { %p390_p3 = scmp.ne.s32.totalorder %s29_s19, %s389_s27  ;;  %p395_p5 = scmp.lt.s32.totalorder %s389_s27, %s389_s27 }
   0xc   :  { %p396_p6 = por %p395_p5, %p394_p4 }
   0xe   :  { %p397_p7 = pnand %p396_p6, %p390_p3 }
  0x10   :  { %400 = shalt.err (!%p397_p7)
}
  0x11   :  { %s474_s28 = smov 64   ;;  %s475_s29 = smov 4  }
  0x12   :  { %34 = dma.hbm_to_vmem [thread:$0]  %s572_s1, 512, %s29_s19, [#allocation6], %s474_s28, %s474_s28, %s475_s29  }
  0x13   :  { %s476_s7 = smov [#allocation2]   ;;  %s477_s9 = smov [#allocation7]  }
  0x14   :  { %s19_s8 = sshll.u32 %s476_s7, 4  ;;  %s42_s10 = sshll.u32 %s477_s9, 4  ;;  %s20_s8 = int_to_ptr.vmem [resolvable:$true] %s19_s8  ;;  %s43_s10 = int_to_ptr.vmem [resolvable:$true] %s42_s10 }
  0x15   :  { %s401_s13 = scalar_lea.hbm %s571_s0, 64 }
  0x16   :  { %p402_p8 = scmp.ne.s32.totalorder %s571_s0, %s401_s13  ;;  %p405_p9 = scmp.lt.u32.totalorder %s401_s13, %s571_s0 }
  0x18   :  { %p407_p10 = pnand %p405_p9, %p402_p8 }
  0x1a   :  { %410 = shalt.err (!%p407_p10)
}
  0x1b   :  { %s411_s1 = scalar_lea.vmem %s20_s8, 64  ;;  %p416_p12 = scmp.lt.s32.totalorder %s20_s8, %s20_s8 }
  0x1c   :  { %p412_p11 = scmp.ne.s32.totalorder %s20_s8, %s411_s1  ;;  %p417_p13 = scmp.lt.s32.totalorder %s411_s1, %s411_s1 }
  0x1e   :  { %p418_p0 = por %p417_p13, %p416_p12 }
  0x20   :  { %p419_p1 = pnand %p418_p0, %p412_p11 }
  0x22   :  { %422 = shalt.err (!%p419_p1)
}
  0x23   :  { %22 = dma.hbm_to_vmem [thread:$0]  %s571_s0, 64, %s20_s8, [#allocation3]  }
  0x24   :  { %s423_s22 = scalar_lea.hbm %s574_s3, 1024 }
  0x25   :  { %p424_p2 = scmp.ne.s32.totalorder %s574_s3, %s423_s22  ;;  %p427_p3 = scmp.lt.u32.totalorder %s423_s22, %s574_s3 }
  0x27   :  { %p429_p4 = pnand %p427_p3, %p424_p2 }
  0x29   :  { %432 = shalt.err (!%p429_p4)
}
  0x2a   :  { %s433_s27 = scalar_lea.vmem %s43_s10, 1024  ;;  %p438_p6 = scmp.lt.s32.totalorder %s43_s10, %s43_s10 }
  0x2b   :  { %p434_p5 = scmp.ne.s32.totalorder %s43_s10, %s433_s27  ;;  %p439_p7 = scmp.lt.s32.totalorder %s433_s27, %s433_s27 }
  0x2d   :  { %p440_p8 = por %p439_p7, %p438_p6 }
  0x2f   :  { %p441_p9 = pnand %p440_p8, %p434_p5 }
  0x31   :  { %444 = shalt.err (!%p441_p9)
}
  0x32   :  { %48 = dma.hbm_to_vmem [thread:$0]  %s574_s3, 1024, %s43_s10, [#allocation6], %s474_s28, %s474_s28, %s475_s29  }
  0x33   :  { %467 = dma.done.wait [#allocation3], 64  }
  0x34   :  { %468 = vsyncadd [#allocation3], 4294967232 }
  0x35   :  { %469 = dma.done.wait [#allocation6], 1536  }
  0x36   :  { %470 = vsyncadd [#allocation6], 4294965760  ;;  %v478_v0 = vmov 0.0   ;;  %vm479_vm0 = vmmov 0   ;;  %v359_v1 = vld [vmem:[#allocation5] sm:$0xff]   ;;  %v360_v2 = vld [vmem:[#allocation5 + $0x8] sm:$0xff]  }
  0x37   :  { %319 = vmatprep.subr.bf16.mxu0 %v478_v0  ;;  %327 = vmatprep.mubr.msk.bf16.mxu0 %vm479_vm0, %v478_v0  ;;  %v361_v3 = vld [vmem:[#allocation5 + $0x10] sm:$0xff]   ;;  %v362_v4 = vld [vmem:[#allocation5 + $0x18] sm:$0xff]   ;;  %vm101_vm1 = vcmask 523264   ;;  %v363_v6 = vld [vmem:[#allocation7] sm:$0xff]  }
  0x38   :  { %331 = vmatprep.subr.bf16.mxu1 %v478_v0  ;;  %347 = vmatprep.mubr.msk.bf16.mxu1 %vm479_vm0, %v478_v0  ;;  %v61_v5 = vld [vmem:[#allocation2] sm:$0xf]  ;;  %v364_v7 = vld [vmem:[#allocation7 + $0x8] sm:$0xff]   ;;  %v365_v8 = vld [vmem:[#allocation7 + $0x10] sm:$0xff]  }
  0x39   :  { %320 = vmatpush3.bf16.msra.mxu0 %v359_v1  ;;  %332 = vmatpush3.bf16.msra.mxu1 %v363_v6  ;;  %v366_v9 = vld [vmem:[#allocation7 + $0x18] sm:$0xff]   ;;  %v367_v10 = vld [vmem:[#allocation7 + $0x20] sm:$0xff]   ;;  %v368_v11 = vld [vmem:[#allocation7 + $0x28] sm:$0xff]  }
  0x3a   :  { %321 = vmatprep.subr.bf16.mxu0 %v478_v0  ;;  %333 = vmatprep.subr.bf16.mxu1 %v478_v0  ;;  %v369_v12 = vld [vmem:[#allocation7 + $0x30] sm:$0xff]   ;;  %v370_v13 = vld [vmem:[#allocation7 + $0x38] sm:$0xff]  }
  0x3b   :  { %v289_v14 = vld [vmem:[%s573_s2] ss:$0 sm:$0xff]  ;;  %s480_s2 = smov [#allocation8]  }
  0x3c   :  { %v296_v25 = vld [vmem:[%s575_s4] ss:$0 sm:$0xff]  ;;  %s279_s7 = sshll.u32 %s480_s2, 4  ;;  %s280_s7 = int_to_ptr.vmem [resolvable:$true] %s279_s7 }
  0x3d   :  { %322 = vmatpush3.bf16.msra.mxu0 %v360_v2  ;;  %334 = vmatpush3.bf16.msra.mxu1 %v364_v7  ;;  %s445_s4 = scalar_lea.vmem %s280_s7, 128  ;;  %p450_p11 = scmp.lt.s32.totalorder %s280_s7, %s280_s7 }
  0x3e   :  { %323 = vmatprep.subr.bf16.mxu0 %v478_v0  ;;  %335 = vmatprep.subr.bf16.mxu1 %v478_v0  ;;  %p446_p10 = scmp.ne.s32.totalorder %s280_s7, %s445_s4  ;;  %p451_p12 = scmp.lt.s32.totalorder %s445_s4, %s445_s4 }
  0x40   :  { %p452_p13 = por %p451_p12, %p450_p11 }
  0x41   :  { %324 = vmatpush3.bf16.msra.mxu0 %v361_v3  ;;  %336 = vmatpush3.bf16.msra.mxu1 %v365_v8 }
  0x42   :  { %325 = vmatprep.subr.bf16.mxu0 %v478_v0  ;;  %337 = vmatprep.subr.bf16.mxu1 %v478_v0  ;;  %p453_p0 = pnand %p452_p13, %p446_p10 }
  0x45   :  { %326 = vmatpush3.bf16.msra.mxu0 %v362_v4  ;;  %338 = vmatpush3.bf16.msra.mxu1 %v366_v9 }
  0x46   :  { %339 = vmatprep.subr.bf16.mxu1 %v478_v0 }
  0x48   :  { %328 = vmatmul.mubr.msk.bf16.vlgmr.msra.gmra.mrb[0].mxu0 %vm101_vm1, %v61_v5 }
  0x49   :  { %340 = vmatpush3.bf16.msra.mxu1 %v367_v10 }
  0x4a   :  { %341 = vmatprep.subr.bf16.mxu1 %v478_v0 }
  0x4d   :  { %342 = vmatpush3.bf16.msra.mxu1 %v368_v11 }
  0x4e   :  { %343 = vmatprep.subr.bf16.mxu1 %v478_v0 }
  0x51   :  { %344 = vmatpush3.bf16.msra.mxu1 %v369_v12 }
  0x52   :  { %345 = vmatprep.subr.bf16.mxu1 %v478_v0 }
  0x55   :  { %346 = vmatpush3.bf16.msra.mxu1 %v370_v13 }
 0x11b   :  { %v139_v15 = vpop.f32.mrb[0].mxu0 }
 0x11c   :  { %v140_v16 = vadd.f32 %v289_v14, %v139_v15  ;;  %v329_v17 = vpop.f32.mrb[1].mxu0 }
 0x11d   :  { %v142_v18 = vpop.f32.mrb[2].mxu0 }
 0x11e   :  { %v295_v19 = vmul.f32 -1.442695, %v140_v16  ;;  %v330_v20 = vpop.f32.mrb[3].mxu0 }
 0x120   :  { %371 = vpow2.f32 %v295_v19 }
 0x12a   :  { %v372_v21 = vpop.eup %371 }
 0x12b   :  { %v148_v22 = vadd.f32 1.0, %v372_v21 }
 0x12d   :  { %373 = vrcp.f32 %v148_v22 }
 0x137   :  { %v374_v23 = vpop.eup %373 }
 0x138   :  { %v151_v24 = vpack.c.bf16 %v374_v23, %v374_v23 }
 0x13a   :  { %348 = vmatmul.mubr.bf16.vlgmr.msra.gmra.mrb[0].mxu1 %v151_v24 }
 0x20d   :  { %v257_v26 = vpop.f32.mrb[0].mxu1 }
 0x20e   :  { %v258_v27 = vadd.f32 %v296_v25, %v257_v26  ;;  %v349_v28 = vpop.f32.mrb[1].mxu1 }
 0x20f   :  { %v260_v29 = vpop.f32.mrb[2].mxu1 }
 0x210   :  { %263 = vmax.xlane.f32.xlu0 %v258_v27  ;;  %v350_v30 = vpop.f32.mrb[3].mxu1 }
 0x29d   :  { %v264_v31 = vpop.xlane.xlu0 %263 }
 0x29e   :  { %v265_v32 = vsub.f32 %v258_v27, %v264_v31 }
 0x2a0   :  { %v266_v33 = vmul.f32 1.442695, %v265_v32 }
 0x2a2   :  { %375 = vpow2.f32 %v266_v33 }
 0x2ac   :  { %v376_v34 = vpop.eup %375 }
 0x2ad   :  { %268 = vadd.xlane.f32.xlu0 %v376_v34 }
 0x33a   :  { %v269_v35 = vpop.xlane.xlu0 %268 }
 0x33b   :  { %377 = vrcp.f32 %v269_v35 }
 0x345   :  { %v378_v36 = vpop.eup %377 }
 0x346   :  { %v271_v37 = vmul.f32 %v378_v36, %v376_v34 }
 0x348   :  { %272 = vst [vmem:[#allocation8] sm:$0xff] %v271_v37 }
 0x349   :  { %456 = shalt.err (!%p453_p0)
}
 0x34a   :  { %s457_s10 = scalar_lea.hbm %s576_s5, 128 }
 0x34b   :  { %p458_p1 = scmp.ne.s32.totalorder %s576_s5, %s457_s10  ;;  %p461_p2 = scmp.lt.u32.totalorder %s457_s10, %s576_s5 }
 0x34d   :  { %p463_p3 = pnand %p461_p2, %p458_p1 }
 0x34f   :  { %466 = shalt.err (!%p463_p3)
}
 0x350   :  { %282 = dma.vmem_to_hbm [thread:$0]  %s280_s7, 128, %s576_s5, [#allocation4]  }
 0x351   :  { %471 = dma.done.wait [#allocation4], 128  }
 0x352   :  { %472 = vsyncadd [#allocation4], 4294967168 }
 0x353   :  { %286 = vsyncpa [#allocation3], 1 }
 0x354   :  { %287 = vsyncpa [#allocation6], 1 }
 0x355   :  { %288 = vsyncpa [#allocation4], 1 }

</bundles_post_ra>
